<compile_context>
chip_gen: v7x
topology: tpu7x:2x2x1
jax: 0.10.0
libtpu: 0.0.40
codegen_flags: <defaults>
</compile_context>

<pallas_src>
import functools

import jax
import jax.numpy as jnp
from jax.experimental import pallas as pl
from jax.experimental.pallas import tpu as pltpu


# --------------------------------------------------------------------------- #
# Kernel
# --------------------------------------------------------------------------- #
def _cl_of_px_kernel(z_ref, w_ref, b_ref, o_ref):
    # z: (tb, d_in), w: (d_in, tn), b: (1, tn), o: (tb, tn)
    acc = jax.lax.dot_general(
        z_ref[...], w_ref[...],
        dimension_numbers=(((1,), (0,)), ((), ())),   # plain x @ W, (K, N) weight
        preferred_element_type=jnp.float32)
    o_ref[...] = jax.nn.sigmoid(acc + b_ref[...]).astype(o_ref.dtype)


# --------------------------------------------------------------------------- #
# One-time parameter prep (hoisted out of the per-call forward path)
# --------------------------------------------------------------------------- #
def cl_of_px_prepare(weight, bias):
    """weight: (d_out, d_in) PyTorch nn.Linear layout; bias: (d_out,).

    Returns (w_t, b2) with w_t: (d_in, d_out), b2: (1, d_out). Call once at
    init time (not per forward).
    """
    d_out, d_in = weight.shape
    w_t = jnp.asarray(jnp.transpose(weight))          # (d_in, d_out), contiguous
    b2 = jnp.asarray(bias).reshape(1, d_out)
    return w_t, b2


# --------------------------------------------------------------------------- #
# Tile selection (budget-driven, single-step whenever it fits)
# --------------------------------------------------------------------------- #
_VMEM_BUDGET_BYTES = 8 * 1024 * 1024   # conservative vs 16/32 MiB scoped defaults


def _vmem_bytes(tb, tn, d_in, itemsize=4):
    # double-buffered z, weight, bias, output tiles
    return 2 * itemsize * (tb * d_in + d_in * tn + tn + tb * tn)


def _select_tiles(batch, d_out, d_in):
    # Per-grid-step overhead (~0.35us) dominates this GEMV-sized problem:
    # prefer a single grid step whenever everything fits the budget.
    if _vmem_bytes(batch, d_out, d_in) <= _VMEM_BUDGET_BYTES:
        return batch, d_out
    # Otherwise tile d_out (prefer >=256-wide: MXU N-width on v6e/v7x).
    tn = 128
    for cand in (2048, 1024, 512, 256):
        if cand <= d_out and 2 * 4 * d_in * cand <= _VMEM_BUDGET_BYTES // 2:
            tn = cand
            break
    tb = batch
    if _vmem_bytes(tb, tn, d_in) > _VMEM_BUDGET_BYTES:
        tb = max(8, (_VMEM_BUDGET_BYTES // (2 * 4 * (d_in + tn + 1))) // 8 * 8)
        tb = min(tb, batch)
    return tb, tn


# --------------------------------------------------------------------------- #
# Forward
# --------------------------------------------------------------------------- #
@functools.partial(jax.jit, static_argnames=("x_c", "x_h", "x_w"))
def cl_of_px_forward(zd, zx, zy, w_t, b2, *, x_c, x_h, x_w):
    """Pallas implementation of ClOfPx.forward.

    zd:(B,zd_dim), zx:(B,zx_dim) or None, zy:(B,zy_dim)
    w_t: (zd+zx+zy, x_w*x_h)  -- prepared by cl_of_px_prepare (transposed)
    b2:  (1, x_w*x_h)
    returns: (B, x_c, x_h, x_w)
    """
    parts = (zd, zy) if zx is None else (zd, zx, zy)
    zcat = jnp.concatenate(parts, axis=-1)            # tiny (B, ~32), negligible
    batch, d_in = zcat.shape
    d_in_w, d_out = w_t.shape
    assert d_in == d_in_w
    assert d_out == x_w * x_h
    # Same constraint the PyTorch .view() imposes (only x_c == 1 is reshapeable).
    assert x_c * x_h * x_w == d_out, "ClOfPx view requires x_c == 1"

    out_dtype = jnp.result_type(zcat.dtype, w_t.dtype)

    tb, tn = _select_tiles(batch, d_out, d_in)
    # batch is the inner grid axis so the weight tile stays VMEM-resident.
    grid = (pl.cdiv(d_out, tn), pl.cdiv(batch, tb))

    cost = pl.CostEstimate(
        flops=2 * batch * d_in * d_out,
        transcendentals=batch * d_out,
        bytes_accessed=4 * (batch * d_in + d_in * d_out + d_out + batch * d_out),
    )

    out2d = pl.pallas_call(
        _cl_of_px_kernel,
        out_shape=jax.ShapeDtypeStruct((batch, d_out), out_dtype),
        grid_spec=pltpu.PrefetchScalarGridSpec(
            num_scalar_prefetch=0,
            grid=grid,
            in_specs=[
                pl.BlockSpec((tb, d_in), lambda j, i: (i, 0)),   # zcat
                pl.BlockSpec((d_in, tn), lambda j, i: (0, j)),   # weight (K, N)
                pl.BlockSpec((1, tn), lambda j, i: (0, j)),      # bias
            ],
            out_specs=pl.BlockSpec((tb, tn), lambda j, i: (i, j)),
        ),
        compiler_params=pltpu.CompilerParams(
            dimension_semantics=("parallel", "parallel")),
        cost_estimate=cost,
    )(zcat, w_t, b2)

    # Free bitcast (no padding to slice off).
    return out2d.reshape(batch, x_c, x_h, x_w)


# --------------------------------------------------------------------------- #
# Reference
# --------------------------------------------------------------------------- #
def _ref_forward(zd, zx, zy, weight, bias, x_c, x_h, x_w):
    if zx is None:
        x = jnp.concatenate((zd, zy), axis=-1)
    else:
        x = jnp.concatenate((zd, zx, zy), axis=-1)
    h = jax.nn.sigmoid(x @ weight.T + bias)
    return h.reshape(zy.shape[0], x_c, x_h, x_w)


if __name__ == "__main__":
    zd_dim, zx_dim, zy_dim = 16, 8, 8
    d_in = zd_dim + zx_dim + zy_dim

    key = jax.random.PRNGKey(0)
    k_zd, k_zx, k_zy, k_w, k_b, k2_w, k2_b = jax.random.split(key, 7)

    # ---- config 1: x_h = x_w = 16, x_c = 1, batch = 8 (d_out = 256) ----
    x_w_, x_h_, x_c_ = 16, 16, 1
    batch = 8
    d_out = x_w_ * x_h_

    zd = jax.random.normal(k_zd, (batch, zd_dim), dtype=jnp.float32)
    zx = jax.random.normal(k_zx, (batch, zx_dim), dtype=jnp.float32)
    zy = jax.random.normal(k_zy, (batch, zy_dim), dtype=jnp.float32)

    bound = 1.0 / (d_in ** 0.5)
    weight = jax.random.uniform(k_w, (d_out, d_in), minval=-bound, maxval=bound,
                                dtype=jnp.float32)
    bias = jax.random.uniform(k_b, (d_out,), minval=-bound, maxval=bound,
                              dtype=jnp.float32)

    w_t, b2 = cl_of_px_prepare(weight, bias)          # one-time param prep
    out = jax.block_until_ready(
        cl_of_px_forward(zd, zx, zy, w_t, b2, x_c=x_c_, x_h=x_h_, x_w=x_w_))
    ref = _ref_forward(zd, zx, zy, weight, bias, x_c_, x_h_, x_w_)
    assert out.shape == (batch, x_c_, x_h_, x_w_)
    assert jnp.allclose(out, ref, atol=1e-5, rtol=1e-5)

    # ---- config 2: zx is None (the other branch of the PyTorch forward) ----
    d_in2 = zd_dim + zy_dim
    bound2 = 1.0 / (d_in2 ** 0.5)
    w2 = weight[:, :d_in2] * (bound2 / bound)
    w2_t, b2_2 = cl_of_px_prepare(w2, bias)
    out2 = jax.block_until_ready(
        cl_of_px_forward(zd, None, zy, w2_t, b2_2, x_c=x_c_, x_h=x_h_, x_w=x_w_))
    ref2 = _ref_forward(zd, None, zy, w2, bias, x_c_, x_h_, x_w_)
    assert jnp.allclose(out2, ref2, atol=1e-5, rtol=1e-5)

    # ---- config 3: MNIST-like 28x28 (d_out = 784, no padding), odd batch ----
    x_w3, x_h3, x_c3 = 28, 28, 1
    batch3 = 6
    d_out3 = x_w3 * x_h3
    zd3 = jax.random.normal(k_zd, (batch3, zd_dim), dtype=jnp.float32)
    zx3 = jax.random.normal(k_zx, (batch3, zx_dim), dtype=jnp.float32)
    zy3 = jax.random.normal(k_zy, (batch3, zy_dim), dtype=jnp.float32)
    weight3 = jax.random.uniform(k2_w, (d_out3, d_in), minval=-bound, maxval=bound,
                                 dtype=jnp.float32)
    bias3 = jax.random.uniform(k2_b, (d_out3,), minval=-bound, maxval=bound,
                               dtype=jnp.float32)
    w3_t, b3_2 = cl_of_px_prepare(weight3, bias3)
    out3 = jax.block_until_ready(
        cl_of_px_forward(zd3, zx3, zy3, w3_t, b3_2, x_c=x_c3, x_h=x_h3, x_w=x_w3))
    ref3 = _ref_forward(zd3, zx3, zy3, weight3, bias3, x_c3, x_h3, x_w3)
    assert out3.shape == (batch3, x_c3, x_h3, x_w3)
    assert jnp.allclose(out3, ref3, atol=1e-5, rtol=1e-5)

    print("KERNEL_OK")
</pallas_src>

<mosaic_0001>
module attributes {stable_mosaic.version = 11 : i64} {
  func.func @_cl_of_px_kernel(%arg0: i32, %arg1: i32, %arg2: memref<8x32xf32, #tpu.memory_space<vmem>>, %arg3: memref<32x256xf32, #tpu.memory_space<vmem>>, %arg4: memref<1x256xf32, #tpu.memory_space<vmem>>, %arg5: memref<8x256xf32, #tpu.memory_space<vmem>>) attributes {dimension_semantics = [#tpu.dimension_semantics<parallel>, #tpu.dimension_semantics<parallel>], iteration_bounds = array<i64: 1, 1>, scalar_prefetch = 0 : i64, scratch_operands = 0 : i64, tpu.core_type = #tpu.core_type<tc>, window_params = [{transform_indices = @transform_0, window_bounds = array<i64: 8, 32>}, {transform_indices = @transform_1, window_bounds = array<i64: 32, 256>}, {transform_indices = @transform_2, window_bounds = array<i64: 1, 256>}, {transform_indices = @transform_3, window_bounds = array<i64: 8, 256>}]} {
    %c0 = arith.constant 0 : index
    %c0_0 = arith.constant 0 : index
    %0 = vector.load %arg2[%c0, %c0_0] : memref<8x32xf32, #tpu.memory_space<vmem>>, vector<8x32xf32>
    %c0_1 = arith.constant 0 : index
    %c0_2 = arith.constant 0 : index
    %1 = vector.load %arg3[%c0_1, %c0_2] : memref<32x256xf32, #tpu.memory_space<vmem>>, vector<32x256xf32>
    %cst = arith.constant dense<0.000000e+00> : vector<8x256xf32>
    %2 = tpu.matmul %0, %1, %cst {dimension_numbers = #tpu.dot_dimension_numbers<[1], [0], [0], [1], [0, 0, 1, 1], [], []>} : vector<8x32xf32>, vector<32x256xf32>, vector<8x256xf32> -> vector<8x256xf32>
    %c0_3 = arith.constant 0 : index
    %c0_4 = arith.constant 0 : index
    %3 = vector.load %arg4[%c0_3, %c0_4] : memref<1x256xf32, #tpu.memory_space<vmem>>, vector<1x256xf32>
    %4 = vector.broadcast %3 : vector<1x256xf32> to vector<8x256xf32>
    %5 = arith.addf %2, %4 : vector<8x256xf32>
    %6 = arith.negf %5 : vector<8x256xf32>
    %7 = math.exp %6 : vector<8x256xf32>
    %cst_5 = arith.constant 1.000000e+00 : f32
    %8 = vector.broadcast %cst_5 : f32 to vector<8x256xf32>
    %9 = arith.addf %8, %7 : vector<8x256xf32>
    %10 = arith.divf %8, %9 : vector<8x256xf32>
    %c0_6 = arith.constant 0 : index
    %c0_7 = arith.constant 0 : index
    %11 = vector.load %arg5[%c0_6, %c0_7] : memref<8x256xf32, #tpu.memory_space<vmem>>, vector<8x256xf32>
    tpu.vector_store %arg5[%c0_6, %c0_7], %10 {strides = array<i32>} : memref<8x256xf32, #tpu.memory_space<vmem>>, vector<8x256xf32>,
    return
  }
  func.func @transform_0(%arg0: i32, %arg1: i32) -> (i32, i32) {
    %c0_i32 = arith.constant 0 : i32
    %c0_i32_0 = arith.constant 0 : i32
    return %arg1, %c0_i32 : i32, i32
  }
  func.func @transform_1(%arg0: i32, %arg1: i32) -> (i32, i32) {
    %c0_i32 = arith.constant 0 : i32
    %c0_i32_0 = arith.constant 0 : i32
    return %c0_i32, %arg0 : i32, i32
  }
  func.func @transform_2(%arg0: i32, %arg1: i32) -> (i32, i32) {
    %c0_i32 = arith.constant 0 : i32
    %c0_i32_0 = arith.constant 0 : i32
    return %c0_i32, %arg0 : i32, i32
  }
  func.func @transform_3(%arg0: i32, %arg1: i32) -> (i32, i32) {
    %c0_i32 = arith.constant 0 : i32
    return %arg1, %arg0 : i32, i32
  }
}

</mosaic_0001>

<bundles_post_ra>
// kernel: cl_of_px_forward.1
= control target key start
LH: loop header
LB: loop body
LE: loop exit
PB: predicated region body
PF: predicated region fallthrough
CT: control target
= control target key end

     0   :  { %8 = vsyncpa [#allocation3], 0  ;;  %s190_s12 = smov [#allocation2]   ;;  %s238_s0 = inlined_call_operand.vmem [shape: f32[8,32], index: 0, kind: input, shape index: {}]   ;;  %s239_s1 = inlined_call_operand.hbm [shape: f32[32,256], index: 1, kind: input, shape index: {}]   ;;  %s240_s2 = inlined_call_operand.vmem [shape: f32[1,256], index: 2, kind: input, shape index: {}]   ;;  %s241_s3 = inlined_call_operand.vmem [shape: f32[8,256], index: 3, kind: output, shape index: {}]  }
   0x1   :  { %s16_s13 = sshll.u32 %s190_s12, 4  ;;  %s166_s16 = scalar_lea.hbm %s239_s1, 1024  ;;  %s17_s13 = int_to_ptr.vmem [resolvable:$true] %s16_s13 }
   0x2   :  { %p167_p0 = scmp.ne.s32.totalorder %s239_s1, %s166_s16  ;;  %p170_p1 = scmp.lt.u32.totalorder %s166_s16, %s239_s1 }
   0x4   :  { %p172_p2 = pnand %p170_p1, %p167_p0 }
   0x6   :  { %175 = shalt.err (!%p172_p2)
}
   0x7   :  { %s176_s21 = scalar_lea.vmem %s17_s13, 1024  ;;  %p181_p4 = scmp.lt.s32.totalorder %s17_s13, %s17_s13 }
   0x8   :  { %p177_p3 = scmp.ne.s32.totalorder %s17_s13, %s176_s21  ;;  %p182_p5 = scmp.lt.s32.totalorder %s176_s21, %s176_s21 }
   0xa   :  { %p183_p6 = por %p182_p5, %p181_p4 }
   0xc   :  { %p184_p7 = pnand %p183_p6, %p177_p3 }
   0xe   :  { %187 = shalt.err (!%p184_p7)
}
   0xf   :  { %s191_s22 = smov 256   ;;  %s192_s23 = smov 16  }
  0x10   :  { %22 = dma.hbm_to_vmem [thread:$0]  %s239_s1, 1024, %s17_s13, [#allocation3], %s191_s22, %s191_s22, %s192_s23  }
  0x11   :  { %188 = dma.done.wait [#allocation3], 1024  }
  0x12   :  { %189 = vsyncadd [#allocation3], 4294966272  ;;  %v193_v0 = vmov 0.0   ;;  %v30_v1 = vld [vmem:[#allocation2 + $0x8] sm:$0xff]  ;;  %v32_v2 = vld [vmem:[#allocation2 + $0x18] sm:$0xff]  ;;  %vm49_vm0 = vcmask 261120   ;;  %v39_v14 = vlaneseq }
  0x13   :  { %117 = vmatprep.mubr.f32.mxu0 %v193_v0  ;;  %v29_v3 = vld [vmem:[#allocation2] sm:$0xff]  ;;  %v146_v4 = vpack.c.bf16 %v32_v2, %v30_v1  ;;  %v31_v5 = vld [vmem:[#allocation2 + $0x10] sm:$0xff]  ;;  %v34_v6 = vld [vmem:[#allocation2 + $0x28] sm:$0xff] }
  0x14   :  { %v36_v7 = vld [vmem:[#allocation2 + $0x38] sm:$0xff]  ;;  %v148_v8 = vpack.c.bf16 %v31_v5, %v29_v3  ;;  %v33_v10 = vld [vmem:[#allocation2 + $0x20] sm:$0xff]  ;;  %v35_v11 = vld [vmem:[#allocation2 + $0x30] sm:$0xff]  ;;  %v40_v15 = vshrl.u32 %v39_v14, 7 }
  0x15   :  { %v150_v9 = vpack.c.bf16 %v36_v7, %v34_v6  ;;  %147 = vmatprep.subr.bf16.mxu0 %v146_v4  ;;  %v152_v12 = vpack.c.bf16 %v35_v11, %v33_v10  ;;  %v28_v13 = vld [vmem:[%s238_s0] sm:$0xff] }
  0x16   :  { %149 = vmatpush1.bf16.msra.mxu0 %v148_v8  ;;  %v41_v16 = vsub.s32 0, %v40_v15  ;;  %v37_v17 = vld [vmem:[%s240_s2] sm:$0x3]  ;;  %v45_v18 = vsub.s32 1, %v40_v15 }
  0x17   :  { %151 = vmatprep.subr.bf16.mxu0 %v150_v9 }
  0x18   :  { %v42_v19 = vrot.slane %v37_v17, %v41_v16  ;;  %v46_v20 = vrot.slane %v37_v17, %v45_v18 }
  0x1a   :  { %153 = vmatpush1.bf16.msra.mxu0 %v152_v12 }
  0x1d   :  { %143 = vmatmul.mubr.msk.f32.vlgmr.msra.gmra.mrb[0].mxu0 %vm49_vm0, %v28_v13 }
  0xf0   :  { %v119_v21 = vpop.f32.mrb[0].mxu0 }
  0xf1   :  { %v120_v22 = vadd.f32 %v119_v21, %v42_v19  ;;  %v121_v23 = vpop.f32.mrb[1].mxu0 }
  0xf2   :  { %v122_v24 = vadd.f32 %v121_v23, %v46_v20 }
  0xf3   :  { %v144_v25 = vmul.f32 -1.442695, %v120_v22 }
  0xf4   :  { %v145_v26 = vmul.f32 -1.442695, %v122_v24 }
  0xf5   :  { %158 = vpow2.f32 %v144_v25 }
  0xf6   :  { %160 = vpow2.f32 %v145_v26 }
  0xff   :  { %v159_v27 = vpop.eup %158 }
 0x100   :  { %v161_v28 = vpop.eup %160  ;;  %v130_v29 = vadd.f32 1.0, %v159_v27 }
 0x101   :  { %v131_v30 = vadd.f32 1.0, %v161_v28 }
 0x102   :  { %162 = vrcp.f32 %v130_v29 }
 0x103   :  { %164 = vrcp.f32 %v131_v30 }
 0x10c   :  { %v163_v31 = vpop.eup %162 }
 0x10d   :  { %v165_v32 = vpop.eup %164  ;;  %136 = vst [vmem:[%s241_s3] sm:$0xff] %v163_v31 }
 0x10e   :  { %137 = vst [vmem:[%s241_s3 + $0x8] sm:$0xff] %v165_v32 }
 0x10f   :  { %142 = vsyncpa [#allocation3], 1 }

</bundles_post_ra>
